<compile_context>
chip_gen: v7x
topology: tpu7x:2x2x1
jax: 0.10.0
libtpu: 0.0.40
codegen_flags: <defaults>
</compile_context>

<pallas_src>
import jax
import jax.numpy as jnp
from jax.experimental import pallas as pl
from jax.experimental.pallas import tpu as pltpu


def attention_walk_kernel(walk_w_ref, tgt_ref, adj_ref, left_ref, right_ref,
                          out_ref):
    """One row-tile of the AttentionWalk loss.

    walk_w_ref : SMEM (W,)        f32  softmax(attention) * num_of_walks * N
    tgt_ref    : VMEM (W, TM, N)  f32  row-tile of the factorized target tensor
    adj_ref    : VMEM (TM, N)     f32  row-tile of the no-edge indicator
    left_ref   : VMEM (TM, D/2)   f32  row-tile of the left factors
    right_ref  : VMEM (D/2, N)    f32  full right factors
    out_ref    : SMEM (1, 1)      f32  sum over this tile of |combined loss|
    """
    window = tgt_ref.shape[0]

    # Weighted walk-sum.  Each weight is a scalar read from SMEM that splats,
    # so this loop is pure VPU multiply-add (num_of_walks*N already folded in).
    acc = walk_w_ref[0] * tgt_ref[0]
    for w in range(1, window):
        acc = acc + walk_w_ref[w] * tgt_ref[w]

    # Factorization logits on the MXU (tiny contraction; not worth tuning).
    z = jnp.dot(left_ref[...], right_ref[...], preferred_element_type=jnp.float32)

    # Shared stable softplus:
    #   log(sigmoid(z))     = -softplus(-z)
    #   log(1 - sigmoid(z)) = -softplus(z) = -softplus(-z) - z
    # => c*wtm*(-log sig) + adj*(-log(1-sig)) = (c*wtm + adj)*softplus(-z) + adj*z
    # softplus(-z) computed stably as max(-z, 0) + log(1 + exp(-|z|)).
    sp_neg = jnp.maximum(-z, 0.0) + jnp.log(1.0 + jnp.exp(-jnp.abs(z)))

    adj = adj_ref[...]
    combined = (acc + adj) * sp_neg + adj * z
    # abs() kept for exact parity with torch.mean(torch.abs(...)).
    out_ref[0, 0] = jnp.sum(jnp.abs(combined))


def _pick_row_tile(n, max_rows):
    """Largest multiple-of-8 divisor of n that is <= max_rows (fallback: n)."""
    cap = min(max(8, int(max_rows)), n)
    best = None
    for tm in range(8, cap + 1, 8):
        if n % tm == 0:
            best = tm
    if best is None:
        best = n  # a block equal to the full dim is always legal
    return best


def attention_walk_loss(attention, weighted_target_tensor, adjacency_opposite,
                        left_factors, right_factors, *,
                        num_of_walks, beta, gamma):
    """Full AttentionWalkLayer.forward loss.  attention: (W,1); target: (W,N,N)."""
    window, n, _ = weighted_target_tensor.shape
    d2 = left_factors.shape[1]

    att = attention.astype(jnp.float32)                    # (W, 1)
    probs = jax.nn.softmax(att, axis=0)                    # (W, 1)
    # Fold num_of_walks * N (the loss scale on the target term) into the walk
    # weights so the kernel saves one full-(TM,N) multiply per tile.
    walk_w = probs[:, 0] * jnp.float32(num_of_walks * n)   # (W,)

    # Row-tile sized against a VMEM budget that is safe on v5e/v6e/v7x:
    #   per row: double-buffered (W+1)*N + D/2 input words + ~8 f32 temps of N.
    vmem_budget = 36 * 1024 * 1024
    per_row = 2 * 4 * ((window + 1) * n + d2) + 8 * 4 * n
    fixed = 2 * 4 * d2 * n + (1 << 20)                     # right factors + slack
    tm = _pick_row_tile(n, (vmem_budget - fixed) // per_row)
    num_tiles = n // tm

    block_bytes = 4 * (window * tm * n + tm * n + tm * d2 + d2 * n)
    vmem_limit = int(2 * block_bytes + 8 * 4 * tm * n + (6 << 20))

    cost = pl.CostEstimate(
        flops=int(2 * n * n * d2 + (2 * window + 10) * n * n),
        transcendentals=int(2 * n * n),
        bytes_accessed=int(4 * ((window + 2) * n * n + 2 * n * d2
                                + window + num_tiles)),
    )

    partial_sums = pl.pallas_call(
        attention_walk_kernel,
        out_shape=jax.ShapeDtypeStruct((num_tiles, 1), jnp.float32),
        grid=(num_tiles,),
        in_specs=[
            pl.BlockSpec(memory_space=pltpu.MemorySpace.SMEM),       # walk weights
            pl.BlockSpec((window, tm, n), lambda i: (0, i, 0)),      # target tensor
            pl.BlockSpec((tm, n), lambda i: (i, 0)),                 # adjacency_opposite
            pl.BlockSpec((tm, d2), lambda i: (i, 0)),                # left factors
            pl.BlockSpec((d2, n), lambda i: (0, 0)),                 # right factors
        ],
        out_specs=pl.BlockSpec((1, 1), lambda i: (i, 0),
                               memory_space=pltpu.MemorySpace.SMEM),
        compiler_params=pltpu.CompilerParams(
            dimension_semantics=("parallel",),
            vmem_limit_bytes=vmem_limit),
        cost_estimate=cost,
    )(walk_w,
      weighted_target_tensor.astype(jnp.float32),
      adjacency_opposite.astype(jnp.float32),
      left_factors.astype(jnp.float32),
      right_factors.astype(jnp.float32))

    loss_on_matrices = jnp.sum(partial_sums) / jnp.float32(n * n)
    # Tiny O(W) / O(N*D) terms stay in plain JAX (not worth kernel traffic).
    norms = (jnp.mean(jnp.abs(left_factors.astype(jnp.float32)))
             + jnp.mean(jnp.abs(right_factors.astype(jnp.float32))))
    loss_on_regularization = beta * jnp.sum(att * att)     # attention.norm(2)**2
    return loss_on_matrices + loss_on_regularization + gamma * norms


def reference_loss(attention, weighted_target_tensor, adjacency_opposite,
                   left_factors, right_factors, *, num_of_walks, beta, gamma):
    """Pure-JAX replica of the PyTorch forward, for verification."""
    probs = jax.nn.softmax(attention, axis=0)              # (W, 1)
    weighted = weighted_target_tensor * probs[:, :, None]  # (W, N, N)
    wtm = jnp.sum(weighted, axis=0)                        # (N, N)
    logits = left_factors @ right_factors
    sig = jax.nn.sigmoid(logits)
    loss_on_target = -wtm * jnp.log(sig)
    loss_opposite = -adjacency_opposite * jnp.log(1.0 - sig)
    loss_on_matrices = jnp.mean(
        jnp.abs(num_of_walks * wtm.shape[0] * loss_on_target + loss_opposite))
    norms = jnp.mean(jnp.abs(left_factors)) + jnp.mean(jnp.abs(right_factors))
    loss_on_regularization = beta * jnp.sum(attention ** 2)
    return loss_on_matrices + loss_on_regularization + gamma * norms


if __name__ == "__main__":
    # Small deterministic config consistent with the module:
    #   shapes = (window, num_nodes, num_nodes)
    num_nodes = 128
    embedd_dim = 64          # half-dim factors of size 32
    window = 5               # shapes[0]
    num_of_walks = 80
    beta = 0.5
    gamma = 0.5

    key = jax.random.PRNGKey(0)
    k1, k2, k3, k4, k5 = jax.random.split(key, 5)

    # Parameters: uniform(-0.01, 0.01) as in initialize_weights().
    left_factors = jax.random.uniform(k1, (num_nodes, embedd_dim // 2),
                                      jnp.float32, -0.01, 0.01)
    right_factors = jax.random.uniform(k2, (embedd_dim // 2, num_nodes),
                                       jnp.float32, -0.01, 0.01)
    attention = jax.random.uniform(k3, (window, 1), jnp.float32, -0.01, 0.01)

    # Forward inputs.
    weighted_target_tensor = jax.random.uniform(
        k4, (window, num_nodes, num_nodes), jnp.float32, 0.0, 1.0)
    adjacency_opposite = (jax.random.uniform(
        k5, (num_nodes, num_nodes), jnp.float32) > 0.9).astype(jnp.float32)

    loss = attention_walk_loss(
        attention, weighted_target_tensor, adjacency_opposite,
        left_factors, right_factors,
        num_of_walks=num_of_walks, beta=beta, gamma=gamma)
    loss = jax.block_until_ready(loss)

    ref = reference_loss(
        attention, weighted_target_tensor, adjacency_opposite,
        left_factors, right_factors,
        num_of_walks=num_of_walks, beta=beta, gamma=gamma)
    ref = jax.block_until_ready(ref)

    assert jnp.allclose(loss, ref, rtol=1e-4, atol=1e-4), (loss, ref)
    print("KERNEL_OK")
</pallas_src>

<mosaic_0001>
module attributes {stable_mosaic.version = 11 : i64} {
  func.func @attention_walk_kernel(%arg0: i32, %arg1: memref<5xf32, #tpu.memory_space<smem>>, %arg2: memref<5x128x128xf32, #tpu.memory_space<vmem>>, %arg3: memref<128x128xf32, #tpu.memory_space<vmem>>, %arg4: memref<128x32xf32, #tpu.memory_space<vmem>>, %arg5: memref<32x128xf32, #tpu.memory_space<vmem>>, %arg6: memref<1x1xf32, #tpu.memory_space<smem>>) attributes {dimension_semantics = [#tpu.dimension_semantics<parallel>], iteration_bounds = array<i64: 1>, scalar_prefetch = 0 : i64, scratch_operands = 0 : i64, tpu.core_type = #tpu.core_type<tc>, window_params = [{transform_indices = @transform_0, window_bounds = array<i64: 5>}, {transform_indices = @transform_1, window_bounds = array<i64: 5, 128, 128>}, {transform_indices = @transform_2, window_bounds = array<i64: 128, 128>}, {transform_indices = @transform_3, window_bounds = array<i64: 128, 32>}, {pipeline_mode = #tpu.pipeline_mode<synchronous>, transform_indices = @transform_4, window_bounds = array<i64: 32, 128>}, {transform_indices = @transform_5, window_bounds = array<i64: 1, 1>}]} {
    %c0 = arith.constant 0 : index
    %0 = memref.load %arg1[%c0] : memref<5xf32, #tpu.memory_space<smem>>
    %c0_0 = arith.constant 0 : index
    %c0_1 = arith.constant 0 : index
    %c0_2 = arith.constant 0 : index
    %1 = vector.load %arg2[%c0_0, %c0_1, %c0_2] : memref<5x128x128xf32, #tpu.memory_space<vmem>>, vector<1x128x128xf32>
    %2 = vector.shape_cast %1 : vector<1x128x128xf32> to vector<128x128xf32>
    %3 = vector.broadcast %0 : f32 to vector<128x128xf32>
    %4 = arith.mulf %3, %2 : vector<128x128xf32>
    %c1 = arith.constant 1 : index
    %5 = memref.load %arg1[%c1] : memref<5xf32, #tpu.memory_space<smem>>
    %c1_3 = arith.constant 1 : index
    %c0_4 = arith.constant 0 : index
    %c0_5 = arith.constant 0 : index
    %6 = vector.load %arg2[%c1_3, %c0_4, %c0_5] : memref<5x128x128xf32, #tpu.memory_space<vmem>>, vector<1x128x128xf32>
    %7 = vector.shape_cast %6 : vector<1x128x128xf32> to vector<128x128xf32>
    %8 = vector.broadcast %5 : f32 to vector<128x128xf32>
    %9 = arith.mulf %8, %7 : vector<128x128xf32>
    %10 = arith.addf %4, %9 : vector<128x128xf32>
    %c2 = arith.constant 2 : index
    %11 = memref.load %arg1[%c2] : memref<5xf32, #tpu.memory_space<smem>>
    %c2_6 = arith.constant 2 : index
    %c0_7 = arith.constant 0 : index
    %c0_8 = arith.constant 0 : index
    %12 = vector.load %arg2[%c2_6, %c0_7, %c0_8] : memref<5x128x128xf32, #tpu.memory_space<vmem>>, vector<1x128x128xf32>
    %13 = vector.shape_cast %12 : vector<1x128x128xf32> to vector<128x128xf32>
    %14 = vector.broadcast %11 : f32 to vector<128x128xf32>
    %15 = arith.mulf %14, %13 : vector<128x128xf32>
    %16 = arith.addf %10, %15 : vector<128x128xf32>
    %c3 = arith.constant 3 : index
    %17 = memref.load %arg1[%c3] : memref<5xf32, #tpu.memory_space<smem>>
    %c3_9 = arith.constant 3 : index
    %c0_10 = arith.constant 0 : index
    %c0_11 = arith.constant 0 : index
    %18 = vector.load %arg2[%c3_9, %c0_10, %c0_11] : memref<5x128x128xf32, #tpu.memory_space<vmem>>, vector<1x128x128xf32>
    %19 = vector.shape_cast %18 : vector<1x128x128xf32> to vector<128x128xf32>
    %20 = vector.broadcast %17 : f32 to vector<128x128xf32>
    %21 = arith.mulf %20, %19 : vector<128x128xf32>
    %22 = arith.addf %16, %21 : vector<128x128xf32>
    %c4 = arith.constant 4 : index
    %23 = memref.load %arg1[%c4] : memref<5xf32, #tpu.memory_space<smem>>
    %c4_12 = arith.constant 4 : index
    %c0_13 = arith.constant 0 : index
    %c0_14 = arith.constant 0 : index
    %24 = vector.load %arg2[%c4_12, %c0_13, %c0_14] : memref<5x128x128xf32, #tpu.memory_space<vmem>>, vector<1x128x128xf32>
    %25 = vector.shape_cast %24 : vector<1x128x128xf32> to vector<128x128xf32>
    %26 = vector.broadcast %23 : f32 to vector<128x128xf32>
    %27 = arith.mulf %26, %25 : vector<128x128xf32>
    %28 = arith.addf %22, %27 : vector<128x128xf32>
    %c0_15 = arith.constant 0 : index
    %c0_16 = arith.constant 0 : index
    %29 = vector.load %arg4[%c0_15, %c0_16] : memref<128x32xf32, #tpu.memory_space<vmem>>, vector<128x32xf32>
    %c0_17 = arith.constant 0 : index
    %c0_18 = arith.constant 0 : index
    %30 = vector.load %arg5[%c0_17, %c0_18] : memref<32x128xf32, #tpu.memory_space<vmem>>, vector<32x128xf32>
    %cst = arith.constant dense<0.000000e+00> : vector<128x128xf32>
    %31 = tpu.matmul %29, %30, %cst {dimension_numbers = #tpu.dot_dimension_numbers<[1], [0], [0], [1], [0, 0, 1, 1], [], []>} : vector<128x32xf32>, vector<32x128xf32>, vector<128x128xf32> -> vector<128x128xf32>
    %cst_19 = arith.constant 0.000000e+00 : f32
    %32 = vector.broadcast %cst_19 : f32 to vector<128x128xf32>
    %33 = arith.subf %32, %31 : vector<128x128xf32>
    %cst_20 = arith.constant 0.000000e+00 : f32
    %34 = vector.broadcast %cst_20 : f32 to vector<128x128xf32>
    %35 = arith.maximumf %33, %34 : vector<128x128xf32>
    %36 = math.absf %31 : vector<128x128xf32>
    %cst_21 = arith.constant 0.000000e+00 : f32
    %37 = vector.broadcast %cst_21 : f32 to vector<128x128xf32>
    %38 = arith.subf %37, %36 : vector<128x128xf32>
    %39 = math.exp %38 : vector<128x128xf32>
    %cst_22 = arith.constant 1.000000e+00 : f32
    %40 = vector.broadcast %cst_22 : f32 to vector<128x128xf32>
    %41 = arith.addf %40, %39 : vector<128x128xf32>
    %42 = math.log %41 : vector<128x128xf32>
    %43 = arith.addf %35, %42 : vector<128x128xf32>
    %c0_23 = arith.constant 0 : index
    %c0_24 = arith.constant 0 : index
    %44 = vector.load %arg3[%c0_23, %c0_24] : memref<128x128xf32, #tpu.memory_space<vmem>>, vector<128x128xf32>
    %45 = arith.addf %28, %44 : vector<128x128xf32>
    %46 = arith.mulf %45, %43 : vector<128x128xf32>
    %47 = arith.mulf %44, %31 : vector<128x128xf32>
    %48 = arith.addf %46, %47 : vector<128x128xf32>
    %49 = math.absf %48 : vector<128x128xf32>
    %50 = vector.shape_cast %49 : vector<128x128xf32> to vector<1x128x128xf32>
    %cst_25 = arith.constant dense<0.000000e+00> : vector<1xf32>
    %51 = vector.multi_reduction <add>, %50, %cst_25 [1, 2] : vector<1x128x128xf32> to vector<1xf32>
    %52 = vector.shape_cast %51 : vector<1xf32> to vector<1x1x1xf32>
    %53 = vector.extract %52[0, 0, 0] : f32 from vector<1x1x1xf32>
    %c0_26 = arith.constant 0 : index
    %c0_27 = arith.constant 0 : index
    %54 = memref.load %arg6[%c0_26, %c0_27] : memref<1x1xf32, #tpu.memory_space<smem>>
    memref.store %53, %arg6[%c0_26, %c0_27] : memref<1x1xf32, #tpu.memory_space<smem>>
    return
  }
  func.func @transform_0(%arg0: i32) -> i32 {
    %c0_i32 = arith.constant 0 : i32
    %c0_i32_0 = arith.constant 0 : i32
    return %c0_i32 : i32
  }
  func.func @transform_1(%arg0: i32) -> (i32, i32, i32) {
    %c0_i32 = arith.constant 0 : i32
    %c0_i32_0 = arith.constant 0 : i32
    %c0_i32_1 = arith.constant 0 : i32
    return %c0_i32, %arg0, %c0_i32_0 : i32, i32, i32
  }
  func.func @transform_2(%arg0: i32) -> (i32, i32) {
    %c0_i32 = arith.constant 0 : i32
    %c0_i32_0 = arith.constant 0 : i32
    return %arg0, %c0_i32 : i32, i32
  }
  func.func @transform_3(%arg0: i32) -> (i32, i32) {
    %c0_i32 = arith.constant 0 : i32
    %c0_i32_0 = arith.constant 0 : i32
    return %arg0, %c0_i32 : i32, i32
  }
  func.func @transform_4(%arg0: i32) -> (i32, i32) {
    %c0_i32 = arith.constant 0 : i32
    %c0_i32_0 = arith.constant 0 : i32
    %c0_i32_1 = arith.constant 0 : i32
    return %c0_i32, %c0_i32_0 : i32, i32
  }
  func.func @transform_5(%arg0: i32) -> (i32, i32) {
    %c0_i32 = arith.constant 0 : i32
    %c0_i32_0 = arith.constant 0 : i32
    return %arg0, %c0_i32 : i32, i32
  }
}

</mosaic_0001>

<bundles_post_ra>
// kernel: tpu_custom_call.1
= control target key start
LH: loop header
LB: loop body
LE: loop exit
PB: predicated region body
PF: predicated region fallthrough
CT: control target
= control target key end

     0   :  { %10 = vsyncpa [#allocation5], 0  ;;  %s1479_s0 = inlined_call_operand.vmem [shape: f32[5], index: 0, kind: input, shape index: {}]   ;;  %s1480_s1 = inlined_call_operand.hbm [shape: f32[5,128,128], index: 1, kind: input, shape index: {}]   ;;  %s1481_s2 = inlined_call_operand.vmem [shape: f32[128,128], index: 2, kind: input, shape index: {}]   ;;  %s1482_s3 = inlined_call_operand.vmem [shape: f32[128,32], index: 3, kind: input, shape index: {}]   ;;  %s1483_s4 = inlined_call_operand.vmem [shape: f32[32,128], index: 4, kind: input, shape index: {}]   ;;  %s1484_s5 = inlined_call_operand.hbm [shape: f32[1,1], index: 5, kind: output, shape index: {}]  }
   0x1   :  { %11 = vsyncpa [#allocation3], 0 }
   0x2   :  { %12 = vsyncpa [#allocation4], 0  ;;  %s19_s20 = sshll.u32 %s1479_s0, 4  ;;  %s20_s20 = int_to_ptr.vmem [resolvable:$true] %s19_s20 }
   0x3   :  { %s952_s21 = scalar_lea.vmem %s20_s20, 16  ;;  %p957_p1 = scmp.lt.s32.totalorder %s20_s20, %s20_s20 }
   0x4   :  { %p953_p0 = scmp.ne.s32.totalorder %s20_s20, %s952_s21  ;;  %p958_p2 = scmp.lt.s32.totalorder %s952_s21, %s952_s21 }
   0x6   :  { %p959_p3 = por %p958_p2, %p957_p1 }
   0x8   :  { %p960_p4 = pnand %p959_p3, %p953_p0 }
   0xa   :  { %963 = shalt.err (!%p960_p4)
}
   0xb   :  { %s1002_s22 = smov [#allocation2]   ;;  %s1003_s23 = smov [#allocation6]  }
   0xc   :  { %22 = dma.vmem_to_smem %s20_s20, 16, %s1002_s22, [#allocation5]  }
   0xd   :  { %s28_s24 = sshll.u32 %s1003_s23, 4  ;;  %s964_s27 = scalar_lea.hbm %s1480_s1, 10240  ;;  %s29_s24 = int_to_ptr.vmem [resolvable:$true] %s28_s24 }
   0xe   :  { %p965_p5 = scmp.ne.s32.totalorder %s1480_s1, %s964_s27  ;;  %p968_p6 = scmp.lt.u32.totalorder %s964_s27, %s1480_s1 }
  0x10   :  { %p970_p7 = pnand %p968_p6, %p965_p5 }
  0x12   :  { %973 = shalt.err (!%p970_p7)
}
  0x13   :  { %s974_s6 = scalar_lea.vmem %s29_s24, 10240  ;;  %p979_p9 = scmp.lt.s32.totalorder %s29_s24, %s29_s24 }
  0x14   :  { %p975_p8 = scmp.ne.s32.totalorder %s29_s24, %s974_s6  ;;  %p980_p10 = scmp.lt.s32.totalorder %s974_s6, %s974_s6 }
  0x16   :  { %p981_p11 = por %p980_p10, %p979_p9 }
  0x18   :  { %p982_p12 = pnand %p981_p11, %p975_p8 }
  0x1a   :  { %985 = shalt.err (!%p982_p12)
}
  0x1b   :  { %s1004_s7 = smov 128   ;;  %s1005_s8 = smov 8  }
  0x1c   :  { %34 = dma.hbm_to_vmem [thread:$0]  %s1480_s1, 10240, %s29_s24, [#allocation3], %s1004_s7, %s1004_s7, %s1005_s8  }
  0x1d   :  { %996 = dma.done.wait [#allocation5], 16  }
  0x1e   :  { %997 = vsyncadd [#allocation5], 4294967280 }
  0x1f   :  { %998 = dma.done.wait [#allocation3], 10240  }
  0x20   :  { %999 = vsyncadd [#allocation3], 4294957056 }
  0x21   :  { %47 = sfence }
  0x22   :  { %v302_v0 = vld [vmem:[%s1483_s4] sm:$0xff]  ;;  %v303_v1 = vld [vmem:[%s1483_s4 + $0x8] sm:$0xff]  ;;  %v304_v2 = vld [vmem:[%s1483_s4 + $0x10] sm:$0xff]  ;;  %vm306_vm0 = vcmask 261120   ;;  %s797_s22 = sld [smem:[#allocation2 + $0x1]]  ;;  %s798_s23 = sld [smem:[#allocation2 + $0x2]] }
  0x23   :  { %v869_v3 = vpack.c.bf16 %v303_v1, %v302_v0  ;;  %v305_v4 = vld [vmem:[%s1483_s4 + $0x18] sm:$0xff]  ;;  %v286_v5 = vld [vmem:[%s1482_s3] sm:$0xff]  ;;  %v287_v8 = vld [vmem:[%s1482_s3 + $0x8] sm:$0xff]  ;;  %s48_s4 = sld [smem:[#allocation2]]  ;;  %s799_s24 = sld [smem:[#allocation2 + $0x3]] }
  0x24   :  { %v294_v6 = vld [vmem:[%s1482_s3 + $0x40] sm:$0xff]  ;;  %v873_v7 = vpack.c.bf16 %v305_v4, %v304_v2  ;;  %845 = vmatprep.mubr.msk.f32.mxu0 %vm306_vm0, %v286_v5  ;;  %v295_v9 = vld [vmem:[%s1482_s3 + $0x48] sm:$0xff]  ;;  %v288_v10 = vld [vmem:[%s1482_s3 + $0x10] sm:$0xff]  ;;  %s986_s0 = scalar_lea.hbm %s1484_s5, 16 }
  0x25   :  { %857 = vmatprep.mubr.msk.f32.mxu1 %vm306_vm0, %v294_v6  ;;  %870 = vmatprep.subr.bf16.mxu0 %v869_v3  ;;  %v296_v11 = vld [vmem:[%s1482_s3 + $0x50] sm:$0xff]  ;;  %v289_v12 = vld [vmem:[%s1482_s3 + $0x18] sm:$0xff]  ;;  %v290_v14 = vld [vmem:[%s1482_s3 + $0x20] sm:$0xff]  ;;  %p987_p13 = scmp.ne.s32.totalorder %s1484_s5, %s986_s0  ;;  %p990_p0 = scmp.lt.u32.totalorder %s986_s0, %s1484_s5 }
  0x26   :  { %877 = vmatprep.subr.bf16.mxu1 %v869_v3  ;;  %872 = vmatpush3.bf16.msra.mxu0 %v869_v3  ;;  %v297_v13 = vld [vmem:[%s1482_s3 + $0x58] sm:$0xff]  ;;  %v298_v15 = vld [vmem:[%s1482_s3 + $0x60] sm:$0xff]  ;;  %v291_v16 = vld [vmem:[%s1482_s3 + $0x28] sm:$0xff] }
  0x27   :  { %879 = vmatpush3.bf16.msra.mxu1 %v869_v3  ;;  %874 = vmatprep.subr.bf16.mxu0 %v873_v7  ;;  %v299_v17 = vld [vmem:[%s1482_s3 + $0x68] sm:$0xff]  ;;  %v292_v18 = vld [vmem:[%s1482_s3 + $0x30] sm:$0xff]  ;;  %v293_v20 = vld [vmem:[%s1482_s3 + $0x38] sm:$0xff]  ;;  %p992_p1 = pnand %p990_p0, %p987_p13 }
  0x28   :  { %878 = vmatprep.subr.bf16.mxu1 %v873_v7  ;;  %v300_v19 = vld [vmem:[%s1482_s3 + $0x70] sm:$0xff]  ;;  %v301_v21 = vld [vmem:[%s1482_s3 + $0x78] sm:$0xff]  ;;  %v50_v22 = vld [vmem:[#allocation6 + $0x8] sm:$0xff]  ;;  %v1130_v25 = vstv %s797_s22  ;;  %s800_s3 = sld [smem:[#allocation2 + $0x4]]  ;;  %v1134_v31 = vstv %s798_s23 }
  0x29   :  { %v1128_v23 = vstv %s48_s4  ;;  %v85_v24 = vld [vmem:[#allocation6 + $0x88] sm:$0xff]  ;;  %v1139_v38 = vstv %s799_s24  ;;  %v49_v39 = vld [vmem:[#allocation6] sm:$0xff]  ;;  %v52_v49 = vld [vmem:[#allocation6 + $0x18] sm:$0xff] }
  0x2a   :  { %876 = vmatpush3.bf16.msra.mxu0 %v873_v7  ;;  %v58_v26 = vld [vmem:[#allocation6 + $0x48] sm:$0xff]  ;;  %v67_v28 = vmul.f32 %v1128_v23, %v50_v22  ;;  %v102_v29 = vmul.f32 %v1130_v25, %v85_v24  ;;  %v84_v42 = vld [vmem:[#allocation6 + $0x80] sm:$0xff]  ;;  %v87_v50 = vld [vmem:[#allocation6 + $0x98] sm:$0xff]  ;;  %v66_v52 = vmul.f32 %v1128_v23, %v49_v39  ;;  %v69_v61 = vmul.f32 %v1128_v23, %v52_v49 }
  0x2b   :  { %880 = vmatpush3.bf16.msra.mxu1 %v873_v7  ;;  %v93_v27 = vld [vmem:[#allocation6 + $0xc8] sm:$0xff]  ;;  %v75_v32 = vmul.f32 %v1128_v23, %v58_v26  ;;  %v57_v43 = vld [vmem:[#allocation6 + $0x40] sm:$0xff]  ;;  %v101_v53 = vmul.f32 %v1130_v25, %v84_v42  ;;  %v104_v62 = vmul.f32 %v1130_v25, %v87_v50  ;;  %v60_v63 = vld [vmem:[#allocation6 + $0x58] sm:$0xff] }
  0x2c   :  { %v136_v30 = vld [vmem:[#allocation6 + $0x108] sm:$0xff]  ;;  %v110_v33 = vmul.f32 %v1130_v25, %v93_v27  ;;  %v118_v35 = vadd.f32 %v102_v29, %v67_v28  ;;  %v92_v44 = vld [vmem:[#allocation6 + $0xc0] sm:$0xff]  ;;  %v74_v54 = vmul.f32 %v1128_v23, %v57_v43  ;;  %v95_v0 = vld [vmem:[#allocation6 + $0xd8] sm:$0xff] }
  0x2d   :  { %846 = vmatmul.mubr.msk.f32.vlgmr.msra.gmra.mrb[0].mxu0 %vm306_vm0, %v287_v8  ;;  %v144_v34 = vld [vmem:[#allocation6 + $0x148] sm:$0xff]  ;;  %v153_v36 = vmul.f32 %v1134_v31, %v136_v30  ;;  %v109_v55 = vmul.f32 %v1130_v25, %v92_v44  ;;  %v135_v58 = vld [vmem:[#allocation6 + $0x100] sm:$0xff]  ;;  %v138_v3 = vld [vmem:[#allocation6 + $0x118] sm:$0xff]  ;;  %v117_v6 = vadd.f32 %v101_v53, %v66_v52 }
  0x2e   :  { %858 = vmatmul.mubr.msk.f32.vlgmr.msra.gmra.mrb[0].mxu1 %vm306_vm0, %v295_v9  ;;  %848 = vmatprep.mubr.msk.f32.mxu0 %vm306_vm0, %v288_v10  ;;  %v187_v37 = vld [vmem:[#allocation6 + $0x188] sm:$0xff]  ;;  %v126_v40 = vadd.f32 %v110_v33, %v75_v32  ;;  %v161_v41 = vmul.f32 %v1134_v31, %v144_v34  ;;  %v1143_v48 = vstv %s800_s3  ;;  %v143_v59 = vld [vmem:[#allocation6 + $0x140] sm:$0xff]  ;;  %v51_v4 = vld [vmem:[#allocation6 + $0x10] sm:$0xff]  ;;  %v152_v7 = vmul.f32 %v1134_v31, %v135_v58 }
  0x2f   :  { %860 = vmatprep.mubr.msk.f32.mxu1 %vm306_vm0, %v296_v11  ;;  %v195_v45 = vld [vmem:[#allocation6 + $0x1c8] sm:$0xff]  ;;  %v169_v46 = vadd.f32 %v153_v36, %v118_v35  ;;  %v204_v47 = vmul.f32 %v1139_v38, %v187_v37  ;;  %v86_v5 = vld [vmem:[#allocation6 + $0x90] sm:$0xff]  ;;  %v125_v8 = vadd.f32 %v109_v55, %v74_v54  ;;  %v160_v9 = vmul.f32 %v1134_v31, %v143_v59  ;;  %v189_v24 = vld [vmem:[#allocation6 + $0x198] sm:$0xff] }
  0x30   :  { %v238_v51 = vld [vmem:[#allocation6 + $0x208] sm:$0xff]  ;;  %v177_v56 = vadd.f32 %v161_v41, %v126_v40  ;;  %v212_v57 = vmul.f32 %v1139_v38, %v195_v45  ;;  %v59_v10 = vld [vmem:[#allocation6 + $0x50] sm:$0xff]  ;;  %v103_v22 = vmul.f32 %v1130_v25, %v86_v5  ;;  %v168_v30 = vadd.f32 %v152_v7, %v117_v6  ;;  %v237_v39 = vld [vmem:[#allocation6 + $0x200] sm:$0xff] }
  0x31   :  { %849 = vmatmul.mubr.msk.f32.gmra.mrb[2].mxu0 %vm306_vm0, %v289_v12  ;;  %v246_v60 = vld [vmem:[#allocation6 + $0x248] sm:$0xff]  ;;  %v220_v1 = vadd.f32 %v204_v47, %v169_v46  ;;  %v255_v2 = vmul.f32 %v1143_v48, %v238_v51  ;;  %v94_v11 = vld [vmem:[#allocation6 + $0xd0] sm:$0xff]  ;;  %v76_v27 = vmul.f32 %v1128_v23, %v59_v10  ;;  %v176_v33 = vadd.f32 %v160_v9, %v125_v8  ;;  %v245_v45 = vld [vmem:[#allocation6 + $0x240] sm:$0xff] }
  0x32   :  { %861 = vmatmul.mubr.msk.f32.gmra.mrb[2].mxu1 %vm306_vm0, %v297_v13  ;;  %851 = vmatprep.mubr.msk.f32.mxu0 %vm306_vm0, %v290_v14  ;;  %v228_v12 = vadd.f32 %v212_v57, %v177_v56  ;;  %v263_v13 = vmul.f32 %v1143_v48, %v246_v60  ;;  %v186_v14 = vld [vmem:[#allocation6 + $0x180] sm:$0xff]  ;;  %v137_v26 = vld [vmem:[#allocation6 + $0x110] sm:$0xff]  ;;  %v111_v28 = vmul.f32 %v1130_v25, %v94_v11  ;;  %v54_v35 = vld [vmem:[#allocation6 + $0x28] sm:$0xff] }
  0x33   :  { %863 = vmatprep.mubr.msk.f32.mxu1 %vm306_vm0, %v298_v15  ;;  %v77_v15 = vmul.f32 %v1128_v23, %v60_v63  ;;  %v271_v29 = vadd.f32 %v255_v2, %v220_v1  ;;  %v203_v32 = vmul.f32 %v1139_v38, %v186_v14  ;;  %v145_v34 = vld [vmem:[#allocation6 + $0x150] sm:$0xff]  ;;  %v89_v36 = vld [vmem:[#allocation6 + $0xa8] sm:$0xff]  ;;  %v206_v47 = vmul.f32 %v1139_v38, %v189_v24  ;;  %v197_v49 = vld [vmem:[#allocation6 + $0x1d8] sm:$0xff] }
  0x34   :  { %v279_v37 = vadd.f32 %v263_v13, %v228_v12  ;;  %v62_v43 = vld [vmem:[#allocation6 + $0x68] sm:$0xff]  ;;  %v154_v51 = vmul.f32 %v1134_v31, %v137_v26  ;;  %v240_v52 = vld [vmem:[#allocation6 + $0x218] sm:$0xff]  ;;  %v188_v53 = vld [vmem:[#allocation6 + $0x190] sm:$0xff]  ;;  %v127_v54 = vadd.f32 %v111_v28, %v76_v27  ;;  %v162_v55 = vmul.f32 %v1134_v31, %v145_v34 }
  0x35   :  { %852 = vmatmul.mubr.msk.f32.gmra.mrb[4].mxu0 %vm306_vm0, %v291_v16  ;;  %v112_v16 = vmul.f32 %v1130_v25, %v95_v0  ;;  %v97_v44 = vld [vmem:[#allocation6 + $0xe8] sm:$0xff]  ;;  %v71_v56 = vmul.f32 %v1128_v23, %v54_v35  ;;  %v106_v57 = vmul.f32 %v1130_v25, %v89_v36  ;;  %v219_v58 = vadd.f32 %v203_v32, %v168_v30  ;;  %v196_v60 = vld [vmem:[#allocation6 + $0x1d0] sm:$0xff]  ;;  %v248_v7 = vld [vmem:[#allocation6 + $0x258] sm:$0xff] }
  0x36   :  { %864 = vmatmul.mubr.msk.f32.gmra.mrb[4].mxu1 %vm306_vm0, %v299_v17  ;;  %854 = vmatprep.mubr.msk.f32.mxu0 %vm306_vm0, %v292_v18  ;;  %v194_v17 = vld [vmem:[#allocation6 + $0x1c0] sm:$0xff]  ;;  %v120_v18 = vadd.f32 %v104_v62, %v69_v61  ;;  %v254_v59 = vmul.f32 %v1143_v48, %v237_v39  ;;  %v140_v61 = vld [vmem:[#allocation6 + $0x128] sm:$0xff]  ;;  %v79_v62 = vmul.f32 %v1128_v23, %v62_v43  ;;  %v239_v11 = vld [vmem:[#allocation6 + $0x210] sm:$0xff] }
  0x37   :  { %866 = vmatprep.mubr.msk.f32.mxu1 %vm306_vm0, %v300_v19  ;;  %v155_v19 = vmul.f32 %v1134_v31, %v138_v3  ;;  %v211_v40 = vmul.f32 %v1139_v38, %v194_v17  ;;  %v128_v41 = vadd.f32 %v112_v16, %v77_v15  ;;  %v114_v63 = vmul.f32 %v1130_v25, %v97_v44  ;;  %v1181_v10 = vld [vmem:[%s1481_s2 + $0x8] sm:$0xff]  ;;  %v53_v30 = vld [vmem:[#allocation6 + $0x20] sm:$0xff] }
  0x38   :  { %v262_v1 = vmul.f32 %v1143_v48, %v245_v45  ;;  %v214_v3 = vmul.f32 %v1139_v38, %v197_v49  ;;  %v257_v6 = vmul.f32 %v1143_v48, %v240_v52  ;;  %v205_v9 = vmul.f32 %v1139_v38, %v188_v53  ;;  %v1191_v17 = vld [vmem:[%s1481_s2 + $0x48] sm:$0xff]  ;;  %v88_v32 = vld [vmem:[#allocation6 + $0xa0] sm:$0xff] }
  0x39   :  { %855 = vmatmul.mubr.msk.f32.gmra.mrb[6].mxu0 %vm306_vm0, %v293_v20  ;;  %v146_v20 = vld [vmem:[#allocation6 + $0x158] sm:$0xff]  ;;  %v171_v46 = vadd.f32 %v155_v19, %v120_v18  ;;  %v227_v0 = vadd.f32 %v211_v40, %v176_v33  ;;  %v178_v12 = vadd.f32 %v162_v55, %v127_v54  ;;  %v213_v13 = vmul.f32 %v1139_v38, %v196_v60  ;;  %v247_v18 = vld [vmem:[#allocation6 + $0x250] sm:$0xff]  ;;  %v191_v19 = vld [vmem:[#allocation6 + $0x1a8] sm:$0xff] }
  0x3a   :  { %867 = vmatmul.mubr.msk.f32.gmra.mrb[6].mxu1 %vm306_vm0, %v301_v21  ;;  %v68_v21 = vmul.f32 %v1128_v23, %v51_v4  ;;  %v163_v42 = vmul.f32 %v1134_v31, %v146_v20  ;;  %v148_v4 = vld [vmem:[#allocation6 + $0x168] sm:$0xff]  ;;  %v122_v14 = vadd.f32 %v106_v57, %v71_v56  ;;  %v157_v15 = vmul.f32 %v1134_v31, %v140_v61  ;;  %v1213_v45 = vld [vmem:[%s1481_s2 + $0x40] sm:$0xff]  ;;  %v1232_v57 = vld [vmem:[%s1481_s2 + $0x18] sm:$0xff] }
  0x3b   :  { %v222_v5 = vadd.f32 %v206_v47, %v171_v46  ;;  %v1186_v16 = vadd.f32 %v1181_v10, %v271_v29  ;;  %1499 = vst [vmem:[#allocation11_spill] sm:$0xff] %v1191_v17  ;;  %v130_v20 = vadd.f32 %v114_v63, %v79_v62  ;;  %v278_v24 = vadd.f32 %v262_v1, %v227_v0  ;;  %v199_v28 = vld [vmem:[#allocation6 + $0x1e8] sm:$0xff]  ;;  %v61_v0 = vld [vmem:[#allocation6 + $0x60] sm:$0xff] }
  0x3c   :  { %v119_v50 = vadd.f32 %v103_v22, %v68_v21  ;;  %v179_v2 = vadd.f32 %v163_v42, %v128_v41  ;;  %v165_v21 = vmul.f32 %v1134_v31, %v148_v4  ;;  %v270_v22 = vadd.f32 %v254_v59, %v219_v58  ;;  %v242_v42 = vld [vmem:[#allocation6 + $0x228] sm:$0xff]  ;;  %1501 = vst [vmem:[#allocation13_spill] sm:$0xff] %v1213_v45  ;;  %v139_v59 = vld [vmem:[#allocation6 + $0x120] sm:$0xff] }
  0x3d   :  { %v265_v27 = vmul.f32 %v1143_v48, %v248_v7  ;;  %v1196_v29 = vadd.f32 %v1191_v17, %v279_v37  ;;  %v273_v33 = vadd.f32 %v257_v6, %v222_v5  ;;  %v256_v35 = vmul.f32 %v1143_v48, %v239_v11  ;;  %v1208_v37 = vld [vmem:[%s1481_s2] sm:$0xff]  ;;  %v250_v49 = vld [vmem:[#allocation6 + $0x268] sm:$0xff] }
  0x3e   :  { %v170_v8 = vadd.f32 %v154_v51, %v119_v50  ;;  %v230_v26 = vadd.f32 %v214_v3, %v179_v2  ;;  %v229_v36 = vadd.f32 %v213_v13, %v178_v12  ;;  %v264_v39 = vmul.f32 %v1143_v48, %v247_v18  ;;  %v96_v1 = vld [vmem:[#allocation6 + $0xe0] sm:$0xff]  ;;  %v1247_v12 = vld [vmem:[%s1481_s2 + $0x58] sm:$0xff] }
  0x3f   :  { %1500 = vst [vmem:[#allocation12_spill] sm:$0xff] %v1196_v29  ;;  %v173_v40 = vadd.f32 %v157_v15, %v122_v14  ;;  %v208_v41 = vmul.f32 %v1139_v38, %v191_v19  ;;  %v181_v46 = vadd.f32 %v165_v21, %v130_v20  ;;  %v216_v47 = vmul.f32 %v1139_v38, %v199_v28  ;;  %v190_v6 = vld [vmem:[#allocation6 + $0x1a0] sm:$0xff]  ;;  %v1258_v21 = vld [vmem:[%s1481_s2 + $0x10] sm:$0xff] }
  0x40   :  { %v221_v34 = vadd.f32 %v205_v9, %v170_v8  ;;  %v70_v50 = vmul.f32 %v1128_v23, %v53_v30  ;;  %v105_v51 = vmul.f32 %v1130_v25, %v88_v32  ;;  %v1222_v54 = vadd.f32 %v1208_v37, %v270_v22  ;;  %v241_v7 = vld [vmem:[#allocation6 + $0x220] sm:$0xff]  ;;  %1504 = vst [vmem:[#allocation16_spill] sm:$0xff] %v1247_v12 }
  0x41   :  { %v1227_v56 = vadd.f32 %v1213_v45, %v278_v24  ;;  %v281_v58 = vadd.f32 %v265_v27, %v230_v26  ;;  %v1236_v61 = vadd.f32 %v1232_v57, %v273_v33  ;;  %v259_v63 = vmul.f32 %v1143_v48, %v242_v42  ;;  %v147_v26 = vld [vmem:[#allocation6 + $0x160] sm:$0xff]  ;;  %v1270_v33 = vld [vmem:[%s1481_s2 + $0x50] sm:$0xff]  ;;  %v56_v42 = vld [vmem:[#allocation6 + $0x38] sm:$0xff] }
  0x42   :  { %v272_v62 = vadd.f32 %v256_v35, %v221_v34  ;;  %v280_v3 = vadd.f32 %v264_v39, %v229_v36  ;;  %v224_v4 = vadd.f32 %v208_v41, %v173_v40  ;;  %v267_v5 = vmul.f32 %v1143_v48, %v250_v49  ;;  %v198_v27 = vld [vmem:[#allocation6 + $0x1e0] sm:$0xff]  ;;  %1506 = vst [vmem:[#allocation18_spill] sm:$0xff] %v1270_v33 }
  0x43   :  { %1502 = vst [vmem:[#allocation14_spill] sm:$0xff] %v1227_v56  ;;  %v232_v13 = vadd.f32 %v216_v47, %v181_v46  ;;  %v121_v14 = vadd.f32 %v105_v51, %v70_v50  ;;  %v156_v15 = vmul.f32 %v1134_v31, %v139_v59  ;;  %v1251_v19 = vadd.f32 %v1247_v12, %v281_v58  ;;  %v249_v41 = vld [vmem:[#allocation6 + $0x260] sm:$0xff]  ;;  %v91_v46 = vld [vmem:[#allocation6 + $0xb8] sm:$0xff] }
  0x44   :  { %v78_v22 = vmul.f32 %v1128_v23, %v61_v0  ;;  %v113_v24 = vmul.f32 %v1130_v25, %v96_v1  ;;  %v1263_v30 = vadd.f32 %v1258_v21, %v272_v62  ;;  %v207_v34 = vmul.f32 %v1139_v38, %v190_v6  ;;  %v142_v59 = vld [vmem:[#allocation6 + $0x138] sm:$0xff] }
  0x45   :  { %1505 = vst [vmem:[#allocation17_spill] sm:$0xff] %v1251_v19  ;;  %v258_v35 = vmul.f32 %v1143_v48, %v241_v7  ;;  %v1276_v39 = vadd.f32 %v1270_v33, %v280_v3  ;;  %v275_v40 = vadd.f32 %v259_v63, %v224_v4  ;;  %v283_v49 = vadd.f32 %v267_v5, %v232_v13  ;;  %v1293_v3 = vld [vmem:[%s1481_s2 + $0x28] sm:$0xff] }
  0x46   :  { %v172_v51 = vadd.f32 %v156_v15, %v121_v14  ;;  %v215_v58 = vmul.f32 %v1139_v38, %v198_v27  ;;  %v129_v63 = vadd.f32 %v113_v24, %v78_v22  ;;  %v1298_v4 = vld [vmem:[%s1481_s2 + $0x68] sm:$0xff]  ;;  %v1301_v5 = vmul.f32 %v1143_v48, %v249_v41  ;;  %v64_v22 = vld [vmem:[#allocation6 + $0x78] sm:$0xff] }
  0x47   :  { %1507 = vst [vmem:[#allocation19_spill] sm:$0xff] %v1276_v39  ;;  %1510 = vst [vmem:[#allocation22_spill] sm:$0xff] %v1298_v4  ;;  %v73_v6 = vmul.f32 %v1128_v23, %v56_v42  ;;  %v108_v7 = vmul.f32 %v1130_v25, %v91_v46  ;;  %v1307_v14 = vadd.f32 %v1293_v3, %v275_v40  ;;  %v99_v41 = vld [vmem:[#allocation6 + $0xf8] sm:$0xff] }
  0x48   :  { %v159_v15 = vmul.f32 %v1134_v31, %v142_v59  ;;  %v1312_v27 = vadd.f32 %v1298_v4, %v283_v49  ;;  %v150_v42 = vld [vmem:[#allocation6 + $0x178] sm:$0xff]  ;;  %v81_v49 = vmul.f32 %v1128_v23, %v64_v22 }
  0x49   :  { %v124_v19 = vadd.f32 %v108_v7, %v73_v6 }
  0x4a   :  { %1511 = vst [vmem:[#allocation23_spill] sm:$0xff] %v1312_v27  ;;  %v244_v27 = vld [vmem:[#allocation6 + $0x238] sm:$0xff] }
 0x100   :  { %v1201_v43 = vpop.f32.mrb[0].mxu0 }
 0x101   :  { %v1203_v44 = vpop.f32.mrb[0].mxu1  ;;  %v533_v52 = vand.u32 2147483647, %v1201_v43  ;;  %v1219_v53 = vpop.f32.mrb[1].mxu0 }
 0x102   :  { %v1224_v55 = vpop.f32.mrb[1].mxu1  ;;  %v532_v60 = vand.u32 2147483647, %v1219_v53 }
 0x103   :  { %v549_v2 = vsub.f32 0.0, %v533_v52  ;;  %v164_v52 = vmul.f32 %v1134_v31, %v147_v26 }
 0x104   :  { %v548_v8 = vsub.f32 0.0, %v532_v60  ;;  %v1240_v9 = vpop.f32.mrb[2].mxu0  ;;  %v541_v60 = vand.u32 2147483647, %v1203_v44 }
 0x105   :  { %v1242_v11 = vpop.f32.mrb[2].mxu1  ;;  %v566_v18 = vmul.f32 1.442695, %v549_v2  ;;  %v1253_v20 = vpop.f32.mrb[3].mxu0  ;;  %v535_v36 = vand.u32 2147483647, %v1240_v9 }
 0x106   :  { %1503 = vst [vmem:[#allocation15_spill] sm:$0xff] %v1242_v11  ;;  %v564_v28 = vmul.f32 1.442695, %v548_v8  ;;  %v1265_v32 = vpop.f32.mrb[3].mxu1  ;;  %v534_v2 = vand.u32 2147483647, %v1253_v20 }
 0x107   :  { %888 = vpow2.f32 %v566_v18  ;;  %v551_v62 = vsub.f32 0.0, %v535_v36  ;;  %v540_v8 = vand.u32 2147483647, %v1224_v55  ;;  %v193_v18 = vld [vmem:[#allocation6 + $0x1b8] sm:$0xff]  ;;  %v543_v24 = vand.u32 2147483647, %v1242_v11 }
 0x108   :  { %v1278_v47 = vpop.f32.mrb[4].mxu0  ;;  %890 = vpow2.f32 %v564_v28  ;;  %v550_v26 = vsub.f32 0.0, %v534_v2  ;;  %v223_v28 = vadd.f32 %v207_v34, %v172_v51  ;;  %v557_v46 = vsub.f32 0.0, %v541_v60 }
 0x109   :  { %v1280_v50 = vpop.f32.mrb[4].mxu1  ;;  %v1285_v0 = vpop.f32.mrb[5].mxu0  ;;  %v570_v13 = vmul.f32 1.442695, %v551_v62  ;;  %v537_v40 = vand.u32 2147483647, %v1278_v47  ;;  %v180_v62 = vadd.f32 %v164_v52, %v129_v63  ;;  %v210_v2 = vmul.f32 %v1139_v38, %v193_v18 }
 0x10a   :  { %1508 = vst [vmem:[#allocation20_spill] sm:$0xff] %v1280_v50  ;;  %v1287_v1 = vpop.f32.mrb[5].mxu1  ;;  %v568_v33 = vmul.f32 1.442695, %v550_v26  ;;  %v556_v51 = vsub.f32 0.0, %v540_v8  ;;  %v116_v60 = vmul.f32 %v1130_v25, %v99_v41  ;;  %v201_v52 = vld [vmem:[#allocation6 + $0x1f8] sm:$0xff]  ;;  %v274_v26 = vadd.f32 %v258_v35, %v223_v28 }
 0x10b   :  { %1509 = vst [vmem:[#allocation21_spill] sm:$0xff] %v1287_v1  ;;  %892 = vpow2.f32 %v570_v13  ;;  %v553_v4 = vsub.f32 0.0, %v537_v40  ;;  %v167_v13 = vmul.f32 %v1134_v31, %v150_v42  ;;  %v559_v63 = vsub.f32 0.0, %v543_v24  ;;  %v252_v42 = vld [vmem:[#allocation6 + $0x278] sm:$0xff]  ;;  %v55_v28 = vld [vmem:[#allocation6 + $0x30] sm:$0xff] }
 0x10c   :  { %v1314_v36 = vpop.f32.mrb[6].mxu0  ;;  %894 = vpow2.f32 %v568_v33  ;;  %v542_v39 = vand.u32 2147483647, %v1265_v32  ;;  %v582_v7 = vmul.f32 1.442695, %v557_v46  ;;  %v231_v17 = vadd.f32 %v215_v58, %v180_v62  ;;  %v90_v58 = vld [vmem:[#allocation6 + $0xb0] sm:$0xff] }
 0x10d   :  { %v1317_v12 = vpop.f32.mrb[6].mxu1  ;;  %v1319_v59 = vpop.f32.mrb[7].mxu0  ;;  %v574_v18 = vmul.f32 1.442695, %v553_v4  ;;  %v536_v22 = vand.u32 2147483647, %v1285_v0  ;;  %v175_v8 = vadd.f32 %v159_v15, %v124_v19  ;;  %v1330_v40 = vmul.f32 %v1143_v48, %v244_v27 }
 0x10e   :  { %1512 = vst [vmem:[#allocation24_spill] sm:$0xff] %v1317_v12  ;;  %v1323_v34 = vpop.f32.mrb[7].mxu1  ;;  %v1333_v41 = vmul.f32 %v1139_v38, %v201_v52  ;;  %v580_v33 = vmul.f32 1.442695, %v556_v51  ;;  %v132_v35 = vadd.f32 %v116_v60, %v81_v49  ;;  %v586_v46 = vmul.f32 1.442695, %v559_v63 }
 0x10f   :  { %896 = vpow2.f32 %v574_v18  ;;  %v552_v29 = vsub.f32 0.0, %v536_v22  ;;  %v558_v56 = vsub.f32 0.0, %v542_v39  ;;  %v1338_v15 = vld [vmem:[%s1481_s2 + $0x20] sm:$0xff]  ;;  %v544_v27 = vand.u32 2147483647, %v1287_v1  ;;  %v141_v51 = vld [vmem:[#allocation6 + $0x130] sm:$0xff] }
 0x110   :  { %v1342_v62 = vmul.f32 %v1143_v48, %v252_v42  ;;  %v282_v39 = vadd.f32 %v1301_v5, %v231_v17  ;;  %v72_v49 = vmul.f32 %v1128_v23, %v55_v28  ;;  %v545_v60 = vand.u32 2147483647, %v1280_v50  ;;  %v243_v42 = vld [vmem:[#allocation6 + $0x230] sm:$0xff]  ;;  %v1359_v28 = vld [vmem:[%s1481_s2 + $0x60] sm:$0xff] }
 0x111   :  { %v889_v6 = vpop.eup %888  ;;  %v572_v19 = vmul.f32 1.442695, %v552_v29  ;;  %v539_v52 = vand.u32 2147483647, %v1314_v36  ;;  %v107_v63 = vmul.f32 %v1130_v25, %v90_v58  ;;  %v584_v18 = vmul.f32 1.442695, %v558_v56 }
 0x112   :  { %v597_v45 = vadd.f32 1.0, %v889_v6  ;;  %v891_v24 = vpop.eup %890  ;;  %v192_v6 = vld [vmem:[#allocation6 + $0x1b0] sm:$0xff]  ;;  %v1353_v22 = vmul.f32 %v1134_v31, %v141_v51  ;;  %v226_v17 = vadd.f32 %v210_v2, %v175_v8  ;;  %1513 = vst [vmem:[#allocation25_spill] sm:$0xff] %v1359_v28  ;;  %v547_v8 = vand.u32 2147483647, %v1317_v12 }
 0x113   :  { %v596_v4 = vadd.f32 1.0, %v891_v24  ;;  %v555_v5 = vsub.f32 0.0, %v539_v52  ;;  %v1364_v56 = vmul.f32 %v1139_v38, %v192_v6  ;;  %v1371_v51 = vmul.f32 %v1143_v48, %v243_v42 }
 0x114   :  { %898 = vlog2.f32 %v597_v45  ;;  %v1345_v45 = vadd.f32 %v1338_v15, %v274_v26  ;;  %v560_v26 = vsub.f32 0.0, %v544_v27  ;;  %v1368_v27 = vadd.f32 %v1359_v28, %v282_v39 }
 0x115   :  { %900 = vpow2.f32 %v582_v7  ;;  %v893_v29 = vpop.eup %892  ;;  %v578_v2 = vmul.f32 1.442695, %v555_v5  ;;  %v123_v6 = vadd.f32 %v107_v63, %v72_v49  ;;  %v563_v12 = vsub.f32 0.0, %v547_v8 }
 0x116   :  { %902 = vlog2.f32 %v596_v4  ;;  %v599_v7 = vadd.f32 1.0, %v893_v29  ;;  %v895_v24 = vpop.eup %894  ;;  %v1361_v4 = vadd.f32 %v167_v13, %v132_v35  ;;  %1514 = vst [vmem:[#allocation26_spill] sm:$0xff] %v1368_v27  ;;  %v538_v29 = vand.u32 2147483647, %v1319_v59 }
 0x117   :  { %904 = vpow2.f32 %v580_v33  ;;  %v501_v33 = vsub.f32 0.0, %v1201_v43  ;;  %v598_v58 = vadd.f32 1.0, %v895_v24  ;;  %v500_v35 = vsub.f32 0.0, %v1219_v53 }
 0x118   :  { %906 = vpow2.f32 %v586_v46  ;;  %v63_v46 = vld [vmem:[#allocation6 + $0x70] sm:$0xff]  ;;  %v588_v52 = vmul.f32 1.442695, %v560_v26  ;;  %v554_v24 = vsub.f32 0.0, %v538_v29  ;;  %v503_v1 = vsub.f32 0.0, %v1240_v9 }
 0x119   :  { %908 = vpow2.f32 %v572_v19  ;;  %v561_v19 = vsub.f32 0.0, %v545_v60  ;;  %v897_v13 = vpop.eup %896  ;;  %v517_v28 = vmax.f32 %v501_v33, 0.0  ;;  %v1381_v33 = vadd.f32 %v1330_v40, %v226_v17 }
 0x11a   :  { %910 = vlog2.f32 %v599_v7  ;;  %v98_v7 = vld [vmem:[#allocation6 + $0xf0] sm:$0xff]  ;;  %v601_v5 = vadd.f32 1.0, %v897_v13  ;;  %v576_v11 = vmul.f32 1.442695, %v554_v24 }
 0x11b   :  { %912 = vpow2.f32 %v584_v18  ;;  %v80_v18 = vmul.f32 %v1128_v23, %v63_v46  ;;  %v590_v42 = vmul.f32 1.442695, %v561_v19  ;;  %v115_v26 = vmul.f32 %v1130_v25, %v98_v7 }
 0x11c   :  { %914 = vlog2.f32 %v598_v58  ;;  %v516_v58 = vmax.f32 %v500_v35, 0.0  ;;  %v709_v23 = vmul.f32 %v1201_v43, %v1181_v10  ;;  %v546_v46 = vand.u32 2147483647, %v1323_v34 }
 0x11d   :  { %916 = vpow2.f32 %v578_v2  ;;  %v594_v25 = vmul.f32 1.442695, %v563_v12  ;;  %v519_v35 = vmax.f32 %v503_v1, 0.0  ;;  %v502_v10 = vsub.f32 0.0, %v1253_v20 }
 0x11e   :  { %v899_v60 = vpop.eup %898  ;;  %918 = vlog2.f32 %v601_v5  ;;  %v562_v12 = vsub.f32 0.0, %v546_v46 }
 0x11f   :  { %v901_v39 = vpop.eup %900  ;;  %v615_v27 = vmul.f32 0.6931472, %v899_v60  ;;  %920 = vpow2.f32 %v588_v52 }
 0x120   :  { %v903_v50 = vpop.eup %902  ;;  %922 = vpow2.f32 %v576_v11  ;;  %v605_v60 = vadd.f32 1.0, %v901_v39 }
 0x121   :  { %v905_v49 = vpop.eup %904  ;;  %v645_v63 = vadd.f32 %v615_v27, %v517_v28  ;;  %v613_v13 = vmul.f32 0.6931472, %v903_v50  ;;  %924 = vpow2.f32 %v590_v42  ;;  %v149_v28 = vld [vmem:[#allocation6 + $0x170] sm:$0xff]  ;;  %v708_v50 = vmul.f32 %v1208_v37, %v1219_v53 }
 0x122   :  { %v907_v2 = vpop.eup %906  ;;  %v604_v17 = vadd.f32 1.0, %v905_v49  ;;  %v518_v53 = vmax.f32 %v502_v10, 0.0  ;;  %v200_v10 = vld [vmem:[#allocation6 + $0x1f0] sm:$0xff] }
 0x123   :  { %v909_v19 = vpop.eup %908  ;;  %v693_v8 = vmul.f32 %v1186_v16, %v645_v63  ;;  %v644_v29 = vadd.f32 %v613_v13, %v516_v58  ;;  %v166_v16 = vmul.f32 %v1134_v31, %v149_v28  ;;  %v505_v58 = vsub.f32 0.0, %v1278_v47 }
 0x124   :  { %v911_v27 = vpop.eup %910  ;;  %v600_v43 = vadd.f32 1.0, %v909_v19  ;;  %v131_v19 = vadd.f32 %v115_v26, %v80_v18  ;;  %v607_v28 = vadd.f32 1.0, %v907_v2  ;;  %v504_v26 = vsub.f32 0.0, %v1285_v0 }
 0x125   :  { %v725_v40 = vadd.f32 %v709_v23, %v693_v8  ;;  %v692_v11 = vmul.f32 %v1222_v54, %v644_v29  ;;  %v619_v52 = vmul.f32 0.6931472, %v911_v27  ;;  %v913_v7 = vpop.eup %912  ;;  %v174_v54 = vadd.f32 %v1353_v22, %v123_v6 }
 0x126   :  { %926 = vlog2.f32 %v600_v43  ;;  %v915_v5 = vpop.eup %914  ;;  %v606_v13 = vadd.f32 1.0, %v913_v7  ;;  %v592_v8 = vmul.f32 1.442695, %v562_v12  ;;  %v710_v6 = vmul.f32 %v1258_v21, %v1253_v20  ;;  %v1405_v7 = vld [vmem:[%s1481_s2 + $0x38] sm:$0xff] }
 0x127   :  { %v741_v24 = vand.u32 2147483647, %v725_v40  ;;  %v724_v42 = vadd.f32 %v708_v50, %v692_v11  ;;  %v647_v63 = vadd.f32 %v619_v52, %v519_v35  ;;  %928 = vpow2.f32 %v594_v25  ;;  %v917_v37 = vpop.eup %916  ;;  %v251_v40 = vld [vmem:[#allocation6 + $0x270] sm:$0xff] }
 0x128   :  { %v617_v1 = vmul.f32 0.6931472, %v915_v5  ;;  %930 = vlog2.f32 %v604_v17  ;;  %v603_v39 = vadd.f32 1.0, %v917_v37  ;;  %v919_v23 = vpop.eup %918  ;;  %v711_v35 = vmul.f32 %v1240_v9, %v1232_v57 }
 0x129   :  { %v740_v49 = vand.u32 2147483647, %v724_v42  ;;  %v695_v31 = vmul.f32 %v1236_v61, %v647_v63  ;;  %v921_v29 = vpop.eup %920  ;;  %932 = vlog2.f32 %v605_v60  ;;  %v623_v27 = vmul.f32 0.6931472, %v919_v23 }
 0x12a   :  { %v646_v46 = vadd.f32 %v617_v1, %v518_v53  ;;  %v923_v50 = vpop.eup %922  ;;  %934 = vlog2.f32 %v603_v39  ;;  %v521_v18 = vmax.f32 %v505_v58, 0.0  ;;  %v608_v17 = vadd.f32 1.0, %v921_v29 }
 0x12b   :  { %v756_v25 = vadd.f32 %v741_v24, %v740_v49  ;;  %v925_v61 = vpop.eup %924  ;;  %936 = vlog2.f32 %v606_v13  ;;  %v602_v43 = vadd.f32 1.0, %v923_v50  ;;  %v727_v2 = vadd.f32 %v711_v35, %v695_v31 }
 0x12c   :  { %v694_v22 = vmul.f32 %v1263_v30, %v646_v46  ;;  %938 = vpow2.f32 %v592_v8  ;;  %v649_v57 = vadd.f32 %v623_v27, %v521_v18  ;;  %v234_v9 = vadd.f32 %v1333_v41, %v1361_v4 }
 0x12d   :  { %940 = vlog2.f32 %v607_v28  ;;  %v217_v20 = vmul.f32 %v1139_v38, %v200_v10  ;;  %v609_v52 = vadd.f32 1.0, %v925_v61  ;;  %v1408_v60 = vmul.f32 %v1143_v48, %v251_v40 }
 0x12e   :  { %v726_v11 = vadd.f32 %v710_v6, %v694_v22  ;;  %942 = vlog2.f32 %v602_v43  ;;  %v520_v5 = vmax.f32 %v504_v26, 0.0  ;;  %v683_v41 = vadd.f32 %v1405_v7, %v1381_v33  ;;  %v1515_v26 = vld [vmem:[#allocation15_spill] sm:$0xff] }
 0x12f   :  { %v225_v38 = vadd.f32 %v1364_v56, %v174_v54  ;;  %v743_v4 = vand.u32 2147483647, %v727_v2  ;;  %944 = vlog2.f32 %v608_v17  ;;  %v182_v63 = vadd.f32 %v166_v16, %v131_v19 }
 0x130   :  { %v927_v21 = vpop.eup %926  ;;  %v742_v30 = vand.u32 2147483647, %v726_v11  ;;  %v697_v53 = vmul.f32 %v1307_v14, %v649_v57  ;;  %v507_v58 = vsub.f32 0.0, %v1314_v36  ;;  %v1416_v48 = vadd.f32 %v1342_v62, %v234_v9 }
 0x131   :  { %v929_v12 = vpop.eup %928  ;;  %v621_v24 = vmul.f32 0.6931472, %v927_v21  ;;  %v508_v49 = vsub.f32 0.0, %v1224_v55  ;;  %946 = vlog2.f32 %v609_v52  ;;  %v713_v56 = vmul.f32 %v1278_v47, %v1293_v3  ;;  %v1516_v52 = vld [vmem:[#allocation21_spill] sm:$0xff] }
 0x132   :  { %v757_v42 = vadd.f32 %v756_v25, %v742_v30  ;;  %v931_v37 = vpop.eup %930  ;;  %v611_v33 = vadd.f32 1.0, %v929_v12  ;;  %v712_v14 = vmul.f32 %v1338_v15, %v1285_v0  ;;  %v276_v54 = vadd.f32 %v1371_v51, %v225_v38  ;;  %v666_v0 = vld [vmem:[%s1481_s2 + $0x30] sm:$0xff] }
 0x133   :  { %v648_v1 = vadd.f32 %v621_v24, %v520_v5  ;;  %v933_v39 = vpop.eup %932  ;;  %v509_v62 = vsub.f32 0.0, %v1203_v44  ;;  %v629_v31 = vmul.f32 0.6931472, %v931_v37  ;;  %v506_v46 = vsub.f32 0.0, %v1319_v59 }
 0x134   :  { %v758_v13 = vadd.f32 %v757_v42, %v743_v4  ;;  %v935_v23 = vpop.eup %934  ;;  %v233_v19 = vadd.f32 %v217_v20, %v182_v63  ;;  %v729_v29 = vadd.f32 %v713_v56, %v697_v53  ;;  %v523_v28 = vmax.f32 %v507_v58, 0.0  ;;  %v1517_v42 = vld [vmem:[#allocation14_spill] sm:$0xff]  ;;  %v1518_v53 = vld [vmem:[#allocation20_spill] sm:$0xff] }
 0x135   :  { %v696_v16 = vmul.f32 %v1345_v45, %v648_v1  ;;  %v937_v8 = vpop.eup %936  ;;  %v627_v27 = vmul.f32 0.6931472, %v935_v23  ;;  %v631_v3 = vmul.f32 0.6931472, %v933_v39  ;;  %v524_v45 = vmax.f32 %v508_v49, 0.0  ;;  %v1519_v56 = vld [vmem:[#allocation12_spill] sm:$0xff] }
 0x136   :  { %v939_v47 = vpop.eup %938  ;;  %v510_v50 = vsub.f32 0.0, %v1265_v32  ;;  %948 = vlog2.f32 %v611_v33  ;;  %v682_v22 = vadd.f32 %v666_v0, %v276_v54  ;;  %v525_v61 = vmax.f32 %v509_v62, 0.0 }
 0x137   :  { %v728_v25 = vadd.f32 %v712_v14, %v696_v16  ;;  %v941_v15 = vpop.eup %940  ;;  %v651_v35 = vadd.f32 %v627_v27, %v523_v28  ;;  %v610_v6 = vadd.f32 1.0, %v939_v47  ;;  %v652_v18 = vadd.f32 %v629_v31, %v524_v45  ;;  %v1522_v28 = vld [vmem:[#allocation24_spill] sm:$0xff]  ;;  %v1523_v47 = vld [vmem:[#allocation19_spill] sm:$0xff] }
 0x138   :  { %v943_v10 = vpop.eup %942  ;;  %v511_v43 = vsub.f32 0.0, %v1515_v26  ;;  %v522_v40 = vmax.f32 %v506_v46, 0.0  ;;  %v633_v2 = vmul.f32 0.6931472, %v937_v8  ;;  %v745_v11 = vand.u32 2147483647, %v729_v29 }
 0x139   :  { %v744_v51 = vand.u32 2147483647, %v728_v25  ;;  %v625_v57 = vmul.f32 0.6931472, %v943_v10  ;;  %v945_v9 = vpop.eup %944  ;;  %v653_v20 = vadd.f32 %v631_v3, %v525_v61  ;;  %v635_v21 = vmul.f32 0.6931472, %v941_v15 }
 0x13a   :  { %v526_v30 = vmax.f32 %v510_v50, 0.0  ;;  %950 = vlog2.f32 %v610_v6  ;;  %v512_v12 = vsub.f32 0.0, %v1516_v52  ;;  %v699_v5 = vmul.f32 %v683_v41, %v651_v35  ;;  %v1520_v41 = vld [vmem:[#allocation13_spill] sm:$0xff]  ;;  %v1521_v25 = vld [vmem:[#allocation11_spill] sm:$0xff] }
 0x13b   :  { %v759_v17 = vadd.f32 %v758_v13, %v744_v51  ;;  %v650_v24 = vadd.f32 %v625_v57, %v522_v40  ;;  %v947_v4 = vpop.eup %946  ;;  %v700_v63 = vmul.f32 %v1517_v42, %v652_v18  ;;  %v527_v37 = vmax.f32 %v511_v43, 0.0  ;;  %v1525_v51 = vld [vmem:[#allocation18_spill] sm:$0xff]  ;;  %v1526_v40 = vld [vmem:[#allocation16_spill] sm:$0xff]  ;;  %v1529_v42 = vld [vmem:[#allocation23_spill] sm:$0xff] }
 0x13c   :  { %v513_v1 = vsub.f32 0.0, %v1518_v53  ;;  %v715_v58 = vmul.f32 %v1314_v36, %v1405_v7  ;;  %v654_v49 = vadd.f32 %v633_v2, %v526_v30  ;;  %v637_v13 = vmul.f32 0.6931472, %v945_v9  ;;  %v1527_v9 = vld [vmem:[#allocation26_spill] sm:$0xff] }
 0x13d   :  { %v760_v38 = vadd.f32 %v759_v17, %v745_v11  ;;  %v698_v33 = vmul.f32 %v682_v22, %v650_v24  ;;  %v714_v39 = vmul.f32 %v666_v0, %v1319_v59  ;;  %v701_v16 = vmul.f32 %v1519_v56, %v653_v20  ;;  %v1524_v0 = vld [vmem:[#allocation17_spill] sm:$0xff] }
 0x13e   :  { %v716_v14 = vmul.f32 %v1520_v41, %v1224_v55  ;;  %v655_v54 = vadd.f32 %v635_v21, %v527_v37  ;;  %v284_v23 = vadd.f32 %v1408_v60, %v233_v19  ;;  %v639_v62 = vmul.f32 0.6931472, %v947_v4  ;;  %v674_v60 = vld [vmem:[%s1481_s2 + $0x70] sm:$0xff]  ;;  %v675_v21 = vld [vmem:[%s1481_s2 + $0x78] sm:$0xff] }
 0x13f   :  { %v528_v31 = vmax.f32 %v512_v12, 0.0  ;;  %v731_v46 = vadd.f32 %v715_v58, %v699_v5  ;;  %v730_v8 = vadd.f32 %v714_v39, %v698_v33  ;;  %v717_v36 = vmul.f32 %v1203_v44, %v1521_v25  ;;  %v1528_v24 = vld [vmem:[#allocation25_spill] sm:$0xff]  ;;  %v1530_v58 = vld [vmem:[#allocation22_spill] sm:$0xff] }
 0x140   :  { %v949_v29 = vpop.eup %948  ;;  %v732_v7 = vadd.f32 %v716_v14, %v700_v63  ;;  %v515_v27 = vsub.f32 0.0, %v1522_v28  ;;  %v514_v59 = vsub.f32 0.0, %v1323_v34  ;;  %v702_v3 = vmul.f32 %v1523_v47, %v654_v49 }
 0x141   :  { %v529_v45 = vmax.f32 %v513_v1, 0.0  ;;  %v656_v55 = vadd.f32 %v637_v13, %v528_v31  ;;  %v746_v50 = vand.u32 2147483647, %v730_v8  ;;  %v733_v19 = vadd.f32 %v717_v36, %v701_v16 }
 0x142   :  { %v703_v15 = vmul.f32 %v1524_v0, %v655_v54  ;;  %v718_v44 = vmul.f32 %v1525_v51, %v1265_v32  ;;  %v690_v35 = vadd.f32 %v674_v60, %v284_v23  ;;  %v747_v6 = vand.u32 2147483647, %v731_v46 }
 0x143   :  { %v657_v22 = vadd.f32 %v639_v62, %v529_v45  ;;  %v643_v10 = vmul.f32 0.6931472, %v949_v29  ;;  %v761_v61 = vadd.f32 %v760_v38, %v746_v50  ;;  %v748_v43 = vand.u32 2147483647, %v732_v7 }
 0x144   :  { %v951_v18 = vpop.eup %950  ;;  %v719_v2 = vmul.f32 %v1515_v26, %v1526_v40  ;;  %v531_v11 = vmax.f32 %v515_v27, 0.0  ;;  %v530_v17 = vmax.f32 %v514_v59, 0.0  ;;  %v734_v57 = vadd.f32 %v718_v44, %v702_v3 }
 0x145   :  { %v704_v20 = vmul.f32 %v1527_v9, %v656_v55  ;;  %v762_v32 = vadd.f32 %v761_v61, %v747_v6  ;;  %v641_v30 = vmul.f32 0.6931472, %v951_v18  ;;  %v749_v12 = vand.u32 2147483647, %v733_v19 }
 0x146   :  { %v735_v5 = vadd.f32 %v719_v2, %v703_v15  ;;  %v720_v38 = vmul.f32 %v1528_v24, %v1516_v52  ;;  %v691_v4 = vadd.f32 %v675_v21, %v1416_v48  ;;  %v705_v26 = vmul.f32 %v1529_v42, %v657_v22 }
 0x147   :  { %v659_v63 = vadd.f32 %v643_v10, %v531_v11  ;;  %v763_v37 = vadd.f32 %v762_v32, %v748_v43  ;;  %v658_v1 = vadd.f32 %v641_v30, %v530_v17  ;;  %v721_v49 = vmul.f32 %v1518_v53, %v1530_v58 }
 0x148   :  { %v750_v13 = vand.u32 2147483647, %v734_v57  ;;  %v736_v33 = vadd.f32 %v720_v38, %v704_v20  ;;  %v722_v16 = vmul.f32 %v674_v60, %v1323_v34  ;;  %v751_v41 = vand.u32 2147483647, %v735_v5 }
 0x149   :  { %v706_v39 = vmul.f32 %v690_v35, %v658_v1  ;;  %v764_v56 = vadd.f32 %v763_v37, %v749_v12  ;;  %v737_v14 = vadd.f32 %v721_v49, %v705_v26  ;;  %v707_v54 = vmul.f32 %v691_v4, %v659_v63 }
 0x14a   :  { %v752_v23 = vand.u32 2147483647, %v736_v33  ;;  %v723_v48 = vmul.f32 %v1522_v28, %v675_v21 }
 0x14b   :  { %v765_v52 = vadd.f32 %v764_v56, %v750_v13  ;;  %v738_v62 = vadd.f32 %v722_v16, %v706_v39  ;;  %v753_v8 = vand.u32 2147483647, %v737_v14 }
 0x14c   :  { %v739_v46 = vadd.f32 %v723_v48, %v707_v54 }
 0x14d   :  { %v766_v31 = vadd.f32 %v765_v52, %v751_v41  ;;  %v754_v25 = vand.u32 2147483647, %v738_v62 }
 0x14e   :  { %v755_v36 = vand.u32 2147483647, %v739_v46 }
 0x14f   :  { %v767_v29 = vadd.f32 %v766_v31, %v752_v23 }
 0x151   :  { %v768_v53 = vadd.f32 %v767_v29, %v753_v8 }
 0x153   :  { %v769_v7 = vadd.f32 %v768_v53, %v754_v25 }
 0x155   :  { %v770_v27 = vadd.f32 %v769_v7, %v755_v36 }
 0x157   :  { %771 = vadd.xlane.f32.xlu0 %v770_v27 }
 0x1e4   :  { %v772_v59 = vpop.xlane.xlu0 %771 }
 0x1e5   :  { %v773_v34 = vrot.slane %v772_v59, 4 }
 0x1e7   :  { %v774_v47 = vadd.f32 %v773_v34, %v772_v59 }
 0x1e9   :  { %v775_v3 = vrot.slane %v774_v47, 2 }
 0x1eb   :  { %v776_v45 = vadd.f32 %v775_v3, %v774_v47 }
 0x1ed   :  { %v777_v55 = vrot.slane %v776_v45, 1 }
 0x1ef   :  { %v778_v50 = vadd.f32 %v777_v55, %v776_v45 }
 0x1f1   :  { %881 = vpush %v778_v50 }
 0x222   :  { %s882_s2 = spop %881 }
 0x223   :  { %781 = sst [smem:[#allocation7]] %s882_s2 }
 0x224   :  { %995 = shalt.err (!%p992_p1)
}
 0x225   :  { %s1006_s9 = smov [#allocation7]  }
 0x226   :  { %789 = dma.smem_to_hbm %s1006_s9, 16, %s1484_s5, [#allocation4]  }
 0x227   :  { %1000 = dma.done.wait [#allocation4], 16  }
 0x228   :  { %1001 = vsyncadd [#allocation4], 4294967280 }
 0x229   :  { %793 = sfence }
 0x22a   :  { %794 = vsyncpa [#allocation3], 1 }
 0x22b   :  { %795 = vsyncpa [#allocation4], 1 }
 0x22c   :  { %796 = vsyncpa [#allocation5], 1 }

</bundles_post_ra>
